<compile_context>
chip_gen: v6e
topology: v6e:2x2x1
jax: 0.10.0
libtpu: 0.0.40
codegen_flags: <defaults>
</compile_context>

<pallas_src>
import jax
import jax.numpy as jnp
from jax.experimental import pallas as pl
from jax.experimental.pallas import tpu as pltpu


def _round_up(x, m):
    return ((x + m - 1) // m) * m


def policy_mlp_kernel(x_ref, w1_ref, b1_ref, w2_ref, b2_ref, w3_ref, b3_ref, o_ref):
    # x_ref: (dim_state, TILE_B)   -- batch on the lane axis
    # w1_ref: (H1, dim_state), b1_ref: (H1, 1)
    # w2_ref: (H2, H1),        b2_ref: (H2, 1)
    # w3_ref: (A, H2),         b3_ref: (A, 1)
    # o_ref:  (A, TILE_B)      -- lane-dense output store
    x = x_ref[...]
    w1 = w1_ref[...]
    dim_state = x.shape[0]

    # Layer 1: K = dim_state (tiny) -> VPU broadcast-FMAs, skip the MXU entirely.
    h1 = b1_ref[...]                               # (H1, 1), broadcasts over lanes
    for k in range(dim_state):                     # static, fully unrolled
        h1 = h1 + w1[:, k:k + 1] * x[k:k + 1, :]   # (H1,1)*(1,TILE_B) -> (H1,TILE_B)
    h1 = jnp.maximum(h1, 0.0)

    # Layer 2: (H2, H1) @ (H1, TILE_B) on the MXU, f32 accumulation.
    h2 = jnp.dot(w2_ref[...], h1, preferred_element_type=jnp.float32) + b2_ref[...]
    h2 = jnp.maximum(h2, 0.0)

    # Layer 3: (A, H2) @ (H2, TILE_B) on the MXU, then tanh on the EUP.
    h3 = jnp.dot(w3_ref[...], h2, preferred_element_type=jnp.float32) + b3_ref[...]
    o_ref[...] = jnp.tanh(h3).astype(o_ref.dtype)


def policy_network_forward(state, params, *, tile_b=2048):
    """state: (B, dim_state) f32.
    params: weights in (out_features, in_features) layout, biases as (out, 1)."""
    w1, b1, w2, b2, w3, b3 = (params["w1"], params["b1"], params["w2"],
                              params["b2"], params["w3"], params["b3"])
    B, dim_state = state.shape
    h1_dim = w1.shape[0]
    h2_dim = w2.shape[0]
    dim_action = w3.shape[0]

    # Batch goes on the lane axis. Pad it to a multiple of the batch tile so
    # every block is full and every store is 128-lane dense.
    tile_b = min(tile_b, _round_up(max(B, 1), 128))
    tile_b = _round_up(tile_b, 128)
    b_pad = _round_up(max(B, 1), tile_b)

    x_t = jnp.pad(state.T.astype(jnp.float32), ((0, 0), (0, b_pad - B)))

    grid = (b_pad // tile_b,)

    def const_spec(shape):
        # Full-array block, same block index every grid step -> stays VMEM-resident.
        return pl.BlockSpec(shape, lambda i: (0, 0))

    out_t = pl.pallas_call(
        policy_mlp_kernel,
        out_shape=jax.ShapeDtypeStruct((dim_action, b_pad), jnp.float32),
        grid=grid,
        in_specs=[
            pl.BlockSpec((dim_state, tile_b), lambda i: (0, i)),   # state tile
            const_spec((h1_dim, dim_state)),                       # W1
            const_spec((h1_dim, 1)),                               # b1
            const_spec((h2_dim, h1_dim)),                          # W2
            const_spec((h2_dim, 1)),                               # b2
            const_spec((dim_action, h2_dim)),                      # W3
            const_spec((dim_action, 1)),                           # b3
        ],
        out_specs=pl.BlockSpec((dim_action, tile_b), lambda i: (0, i)),
        compiler_params=pltpu.CompilerParams(
            dimension_semantics=("parallel",),  # batch tiles shard across TCs on v7x
        ),
    )(x_t, w1, b1, w2, b2, w3, b3)

    # Undo padding / transpose in the wrapper (layout plumbing stays out of the kernel).
    return out_t[:, :B].T


def _reference_forward(state, params):
    """Pure-JAX reference of the same math (weights (out, in), biases (out, 1))."""
    ref = jnp.maximum(state @ params["w1"].T + params["b1"].T, 0.0)
    ref = jnp.maximum(ref @ params["w2"].T + params["b2"].T, 0.0)
    return jnp.tanh(ref @ params["w3"].T + params["b3"].T)


def init_params(key, dim_state, dim_action):
    """Deterministic init mimicking nn.Linear default: U(-1/sqrt(fan_in), 1/sqrt(fan_in)).
    Weights stored in PyTorch (out, in) layout; biases as (out, 1)."""
    def linear(key, fan_in, fan_out):
        kw, kb = jax.random.split(key)
        bound = 1.0 / jnp.sqrt(jnp.float32(fan_in))
        w = jax.random.uniform(kw, (fan_out, fan_in), jnp.float32, -bound, bound)
        b = jax.random.uniform(kb, (fan_out, 1), jnp.float32, -bound, bound)
        return w, b

    k1, k2, k3 = jax.random.split(key, 3)
    w1, b1 = linear(k1, dim_state, 32)
    w2, b2 = linear(k2, 32, 32)
    w3, b3 = linear(k3, 32, dim_action)
    return {"w1": w1, "b1": b1, "w2": w2, "b2": b2, "w3": w3, "b3": b3}


if __name__ == "__main__":
    dim_state = 3     # Pendulum-v1 observation dim
    dim_action = 1    # Pendulum-v1 action dim
    batch = 8

    key = jax.random.PRNGKey(0)
    k_params, k_state, k_state2 = jax.random.split(key, 3)

    params = init_params(k_params, dim_state, dim_action)

    # Small batch (single grid step).
    state = jax.random.normal(k_state, (batch, dim_state), jnp.float32)
    forward = jax.jit(policy_network_forward)
    out = jax.block_until_ready(forward(state, params))
    ref = _reference_forward(state, params)
    assert out.shape == (batch, dim_action)
    assert jnp.allclose(out, ref, atol=1e-5, rtol=1e-5)

    # Larger batch with a small tile to exercise the multi-tile (grid > 1) path.
    state2 = jax.random.normal(k_state2, (300, dim_state), jnp.float32)
    forward_tiled = jax.jit(lambda s, p: policy_network_forward(s, p, tile_b=128))
    out2 = jax.block_until_ready(forward_tiled(state2, params))
    ref2 = _reference_forward(state2, params)
    assert out2.shape == (300, dim_action)
    assert jnp.allclose(out2, ref2, atol=1e-5, rtol=1e-5)

    print("KERNEL_OK")
</pallas_src>

<mosaic_0001>
module attributes {stable_mosaic.version = 11 : i64} {
  func.func @policy_mlp_kernel(%arg0: i32, %arg1: memref<3x128xf32, #tpu.memory_space<vmem>>, %arg2: memref<32x3xf32, #tpu.memory_space<vmem>>, %arg3: memref<32x1xf32, #tpu.memory_space<vmem>>, %arg4: memref<32x32xf32, #tpu.memory_space<vmem>>, %arg5: memref<32x1xf32, #tpu.memory_space<vmem>>, %arg6: memref<1x32xf32, #tpu.memory_space<vmem>>, %arg7: memref<1x1xf32, #tpu.memory_space<vmem>>, %arg8: memref<1x128xf32, #tpu.memory_space<vmem>>) attributes {dimension_semantics = [#tpu.dimension_semantics<parallel>], iteration_bounds = array<i64: 1>, scalar_prefetch = 0 : i64, scratch_operands = 0 : i64, tpu.core_type = #tpu.core_type<tc>, window_params = [{transform_indices = @transform_0, window_bounds = array<i64: 3, 128>}, {pipeline_mode = #tpu.pipeline_mode<synchronous>, transform_indices = @transform_1, window_bounds = array<i64: 32, 3>}, {pipeline_mode = #tpu.pipeline_mode<synchronous>, transform_indices = @transform_2, window_bounds = array<i64: 32, 1>}, {pipeline_mode = #tpu.pipeline_mode<synchronous>, transform_indices = @transform_3, window_bounds = array<i64: 32, 32>}, {pipeline_mode = #tpu.pipeline_mode<synchronous>, transform_indices = @transform_4, window_bounds = array<i64: 32, 1>}, {pipeline_mode = #tpu.pipeline_mode<synchronous>, transform_indices = @transform_5, window_bounds = array<i64: 1, 32>}, {pipeline_mode = #tpu.pipeline_mode<synchronous>, transform_indices = @transform_6, window_bounds = array<i64: 1, 1>}, {transform_indices = @transform_7, window_bounds = array<i64: 1, 128>}]} {
    %c0 = arith.constant 0 : index
    %c0_0 = arith.constant 0 : index
    %0 = vector.load %arg1[%c0, %c0_0] : memref<3x128xf32, #tpu.memory_space<vmem>>, vector<3x128xf32>
    %c0_1 = arith.constant 0 : index
    %c0_2 = arith.constant 0 : index
    %1 = vector.load %arg2[%c0_1, %c0_2] : memref<32x3xf32, #tpu.memory_space<vmem>>, vector<32x3xf32>
    %c0_3 = arith.constant 0 : index
    %c0_4 = arith.constant 0 : index
    %2 = vector.load %arg3[%c0_3, %c0_4] : memref<32x1xf32, #tpu.memory_space<vmem>>, vector<32x1xf32>
    %3 = vector.extract_strided_slice %1 {offsets = [0, 0], sizes = [32, 1], strides = [1, 1]} : vector<32x3xf32> to vector<32x1xf32>
    %4 = vector.extract_strided_slice %0 {offsets = [0, 0], sizes = [1, 128], strides = [1, 1]} : vector<3x128xf32> to vector<1x128xf32>
    %5 = vector.broadcast %3 : vector<32x1xf32> to vector<32x128xf32>
    %6 = vector.broadcast %4 : vector<1x128xf32> to vector<32x128xf32>
    %7 = arith.mulf %5, %6 : vector<32x128xf32>
    %8 = vector.broadcast %2 : vector<32x1xf32> to vector<32x128xf32>
    %9 = arith.addf %8, %7 : vector<32x128xf32>
    %10 = vector.extract_strided_slice %1 {offsets = [0, 1], sizes = [32, 1], strides = [1, 1]} : vector<32x3xf32> to vector<32x1xf32>
    %11 = vector.extract_strided_slice %0 {offsets = [1, 0], sizes = [1, 128], strides = [1, 1]} : vector<3x128xf32> to vector<1x128xf32>
    %12 = vector.broadcast %10 : vector<32x1xf32> to vector<32x128xf32>
    %13 = vector.broadcast %11 : vector<1x128xf32> to vector<32x128xf32>
    %14 = arith.mulf %12, %13 : vector<32x128xf32>
    %15 = arith.addf %9, %14 : vector<32x128xf32>
    %16 = vector.extract_strided_slice %1 {offsets = [0, 2], sizes = [32, 1], strides = [1, 1]} : vector<32x3xf32> to vector<32x1xf32>
    %17 = vector.extract_strided_slice %0 {offsets = [2, 0], sizes = [1, 128], strides = [1, 1]} : vector<3x128xf32> to vector<1x128xf32>
    %18 = vector.broadcast %16 : vector<32x1xf32> to vector<32x128xf32>
    %19 = vector.broadcast %17 : vector<1x128xf32> to vector<32x128xf32>
    %20 = arith.mulf %18, %19 : vector<32x128xf32>
    %21 = arith.addf %15, %20 : vector<32x128xf32>
    %cst = arith.constant 0.000000e+00 : f32
    %22 = vector.broadcast %cst : f32 to vector<32x128xf32>
    %23 = arith.maximumf %21, %22 : vector<32x128xf32>
    %c0_5 = arith.constant 0 : index
    %c0_6 = arith.constant 0 : index
    %24 = vector.load %arg4[%c0_5, %c0_6] : memref<32x32xf32, #tpu.memory_space<vmem>>, vector<32x32xf32>
    %cst_7 = arith.constant dense<0.000000e+00> : vector<32x128xf32>
    %25 = tpu.matmul %24, %23, %cst_7 {dimension_numbers = #tpu.dot_dimension_numbers<[1], [0], [0], [1], [0, 0, 1, 1], [], []>} : vector<32x32xf32>, vector<32x128xf32>, vector<32x128xf32> -> vector<32x128xf32>
    %c0_8 = arith.constant 0 : index
    %c0_9 = arith.constant 0 : index
    %26 = vector.load %arg5[%c0_8, %c0_9] : memref<32x1xf32, #tpu.memory_space<vmem>>, vector<32x1xf32>
    %27 = vector.broadcast %26 : vector<32x1xf32> to vector<32x128xf32>
    %28 = arith.addf %25, %27 : vector<32x128xf32>
    %cst_10 = arith.constant 0.000000e+00 : f32
    %29 = vector.broadcast %cst_10 : f32 to vector<32x128xf32>
    %30 = arith.maximumf %28, %29 : vector<32x128xf32>
    %c0_11 = arith.constant 0 : index
    %c0_12 = arith.constant 0 : index
    %31 = vector.load %arg6[%c0_11, %c0_12] : memref<1x32xf32, #tpu.memory_space<vmem>>, vector<1x32xf32>
    %cst_13 = arith.constant dense<0.000000e+00> : vector<1x128xf32>
    %32 = tpu.matmul %31, %30, %cst_13 {dimension_numbers = #tpu.dot_dimension_numbers<[1], [0], [0], [1], [0, 0, 1, 1], [], []>} : vector<1x32xf32>, vector<32x128xf32>, vector<1x128xf32> -> vector<1x128xf32>
    %c0_14 = arith.constant 0 : index
    %c0_15 = arith.constant 0 : index
    %33 = vector.load %arg7[%c0_14, %c0_15] : memref<1x1xf32, #tpu.memory_space<vmem>>, vector<1x1xf32>
    %34 = vector.broadcast %33 : vector<1x1xf32> to vector<1x128xf32>
    %35 = arith.addf %32, %34 : vector<1x128xf32>
    %36 = math.tanh %35 : vector<1x128xf32>
    %c0_16 = arith.constant 0 : index
    %c0_17 = arith.constant 0 : index
    %37 = vector.load %arg8[%c0_16, %c0_17] : memref<1x128xf32, #tpu.memory_space<vmem>>, vector<1x128xf32>
    tpu.vector_store %arg8[%c0_16, %c0_17], %36 {strides = array<i32>} : memref<1x128xf32, #tpu.memory_space<vmem>>, vector<1x128xf32>,
    return
  }
  func.func @transform_0(%arg0: i32) -> (i32, i32) {
    %c0_i32 = arith.constant 0 : i32
    %c0_i32_0 = arith.constant 0 : i32
    return %c0_i32, %arg0 : i32, i32
  }
  func.func @transform_1(%arg0: i32) -> (i32, i32) {
    %c0_i32 = arith.constant 0 : i32
    %c0_i32_0 = arith.constant 0 : i32
    %c0_i32_1 = arith.constant 0 : i32
    return %c0_i32, %c0_i32_0 : i32, i32
  }
  func.func @transform_2(%arg0: i32) -> (i32, i32) {
    %c0_i32 = arith.constant 0 : i32
    %c0_i32_0 = arith.constant 0 : i32
    %c0_i32_1 = arith.constant 0 : i32
    return %c0_i32, %c0_i32_0 : i32, i32
  }
  func.func @transform_3(%arg0: i32) -> (i32, i32) {
    %c0_i32 = arith.constant 0 : i32
    %c0_i32_0 = arith.constant 0 : i32
    %c0_i32_1 = arith.constant 0 : i32
    return %c0_i32, %c0_i32_0 : i32, i32
  }
  func.func @transform_4(%arg0: i32) -> (i32, i32) {
    %c0_i32 = arith.constant 0 : i32
    %c0_i32_0 = arith.constant 0 : i32
    %c0_i32_1 = arith.constant 0 : i32
    return %c0_i32, %c0_i32_0 : i32, i32
  }
  func.func @transform_5(%arg0: i32) -> (i32, i32) {
    %c0_i32 = arith.constant 0 : i32
    %c0_i32_0 = arith.constant 0 : i32
    %c0_i32_1 = arith.constant 0 : i32
    return %c0_i32, %c0_i32_0 : i32, i32
  }
  func.func @transform_6(%arg0: i32) -> (i32, i32) {
    %c0_i32 = arith.constant 0 : i32
    %c0_i32_0 = arith.constant 0 : i32
    %c0_i32_1 = arith.constant 0 : i32
    return %c0_i32, %c0_i32_0 : i32, i32
  }
  func.func @transform_7(%arg0: i32) -> (i32, i32) {
    %c0_i32 = arith.constant 0 : i32
    %c0_i32_0 = arith.constant 0 : i32
    return %c0_i32, %arg0 : i32, i32
  }
}

</mosaic_0001>

<bundles_post_ra>
// kernel: policy_network_forward.1
= control target key start
LH: loop header
LB: loop body
LE: loop exit
PB: predicated region body
PF: predicated region fallthrough
CT: control target
= control target key end

     0   :  { %v433_v0 = vmov 1   ;;  %v434_v1 = vmov 0   ;;  %v435_v7 = vmov 2   ;;  %vm177_vm0 = vcmask 261120   ;;  %s552_s2 = inlined_call_operand.vmem [shape: f32[32,1], index: 2, kind: input, shape index: {}]   ;;  %s553_s1 = inlined_call_operand.vmem [shape: f32[32,3], index: 1, kind: input, shape index: {}]   ;;  %s554_s3 = inlined_call_operand.vmem [shape: f32[32,32], index: 3, kind: input, shape index: {}]   ;;  %s555_s4 = inlined_call_operand.vmem [shape: f32[32,1], index: 4, kind: input, shape index: {}]   ;;  %s556_s6 = inlined_call_operand.<no memory space> [shape: f32[1,1], index: 6, kind: input, shape index: {}]   ;;  %s557_s0 = inlined_call_operand.vmem [shape: f32[3,128], index: 0, kind: input, shape index: {}]   ;;  %s558_s5 = inlined_call_operand.vmem [shape: f32[1,32], index: 5, kind: input, shape index: {}]   ;;  %s559_s7 = inlined_call_operand.vmem [shape: f32[1,128], index: 7, kind: output, shape index: {}]  }
   0x1   :  { %420 = vset.pattern.permute.xlu0 %v433_v0  ;;  %417 = vset.pattern.permute.xlu1 %v434_v1  ;;  %v36_v2 = vld [vmem:[%s552_s2 + $0x18] sm:$0xff]  ;;  %v31_v3 = vld [vmem:[%s553_s1 + $0x10] sm:$0xff]  ;;  %v30_v6 = vld [vmem:[%s553_s1 + $0x8] sm:$0xff]  ;;  %v12_v14 = vstv %s556_s6  ;;  %v57_v18 = vlaneseq  ;;  %vm437_vm1 = vmmov 0  }
   0x2   :  { %82 = vperm.xlu1 %417, %v36_v2   ;;  %98 = vperm.xlu0 %420, %v31_v3   ;;  %v32_v4 = vld [vmem:[%s553_s1 + $0x18] sm:$0xff]  ;;  %v35_v5 = vld [vmem:[%s552_s2 + $0x10] sm:$0xff]  ;;  %v34_v8 = vld [vmem:[%s552_s2 + $0x8] sm:$0xff]  ;;  %13 = vst [vmem:[#allocation2] sm:$0x1] %v12_v14 }
   0x3   :  { %v29_v9 = vld [vmem:[%s553_s1] sm:$0xff]  ;;  %v156_v12 = vld [vmem:[%s555_s4 + $0x18] sm:$0xff]  ;;  %v155_v13 = vld [vmem:[%s555_s4 + $0x10] sm:$0xff]  ;;  %v521_v19 = vshrl.u32 %v57_v18, 7 }
   0x4   :  { %v33_v10 = vld [vmem:[%s552_s2] sm:$0xff]  ;;  %v154_v15 = vld [vmem:[%s555_s4 + $0x8] sm:$0xff] }
   0x5   :  { %v149_v11 = vld [vmem:[%s554_s3] sm:$0xff]  ;;  %v59_v22 = vsub.s32 0, %v521_v19  ;;  %v107_v27 = vsub.s32 1, %v521_v19  ;;  %v135_v29 = vsub.s32 2, %v521_v19 }
   0x6   :  { %418 = vset.pattern.permute.xlu1 %v433_v0  ;;  %421 = vset.pattern.permute.xlu0 %v434_v1  ;;  %v153_v16 = vld [vmem:[%s555_s4] sm:$0xff] }
   0x7   :  { %102 = vperm.xlu1 %418, %v32_v4   ;;  %54 = vperm.xlu0 %421, %v32_v4   ;;  %v28_v23 = vld [vmem:[%s557_s0] sm:$0x7] }
   0x8   :  { %395 = vmatprep.mubr.msk.f32.mxu0 %vm177_vm0, %v149_v11  ;;  %v60_v24 = vrot.slane %v28_v23, %v59_v22  ;;  %v108_v31 = vrot.slane %v28_v23, %v107_v27  ;;  %v136_v34 = vrot.slane %v28_v23, %v135_v29  ;;  %v279_v29 = vld [vmem:[%s558_s5] sm:$0x1] }
   0x9   :  { %v280_v17 = vld [vmem:[#allocation2] sm:$0x1] }
   0xb   :  { %419 = vset.pattern.permute.xlu1 %v434_v1  ;;  %49 = vperm.xlu0 %421, %v31_v3  }
   0xc   :  { %77 = vperm.xlu1 %419, %v35_v5  }
   0xf   :  { %44 = vperm.xlu0 %421, %v30_v6  }
  0x10   :  { %422 = vset.pattern.permute.xlu1 %v435_v7 }
  0x11   :  { %130 = vperm.xlu1 %422, %v32_v4  }
  0x13   :  { %72 = vperm.xlu0 %421, %v34_v8   ;;  %v151_v8 = vld [vmem:[%s554_s3 + $0x10] sm:$0xff] }
  0x15   :  { %423 = vset.pattern.permute.xlu1 %v434_v1 }
  0x16   :  { %39 = vperm.xlu1 %423, %v29_v9  }
  0x17   :  { %67 = vperm.xlu0 %421, %v33_v10   ;;  %v436_v10 = vmov 0.0  }
  0x18   :  { %401 = vmatprep.subr.mxu1 %v436_v10  ;;  %409 = vmatprep.mubr.msk.f32.mxu1 %vm437_vm1, %v436_v10 }
  0x1a   :  { %424 = vset.pattern.permute.xlu1 %v433_v0 }
  0x1b   :  { %94 = vperm.xlu1 %424, %v30_v6   ;;  %427 = vset.pattern.permute.xlu0 %v435_v7 }
  0x1c   :  { %122 = vperm.xlu0 %427, %v30_v6  }
  0x1f   :  { %425 = vset.pattern.permute.xlu1 %v435_v7 }
  0x20   :  { %126 = vperm.xlu1 %425, %v31_v3   ;;  %430 = vset.pattern.permute.xlu0 %v434_v1 }
  0x21   :  { %169 = vperm.xlu0 %430, %v155_v13  }
  0x24   :  { %426 = vset.pattern.permute.xlu1 %v433_v0 }
  0x25   :  { %90 = vperm.xlu1 %426, %v29_v9   ;;  %283 = vperm.xlu0 %430, %v280_v17  }
  0x29   :  { %428 = vset.pattern.permute.xlu1 %v435_v7  ;;  %v150_v7 = vld [vmem:[%s554_s3 + $0x8] sm:$0xff] }
  0x2a   :  { %118 = vperm.xlu1 %428, %v29_v9   ;;  %v152_v9 = vld [vmem:[%s554_s3 + $0x18] sm:$0xff] }
  0x2e   :  { %429 = vset.pattern.permute.xlu1 %v434_v1 }
  0x2f   :  { %174 = vperm.xlu1 %429, %v156_v12  }
  0x33   :  { %164 = vperm.xlu1 %429, %v154_v15  }
  0x37   :  { %159 = vperm.xlu1 %429, %v153_v16  }
  0x7d   :  { %v83_v20 = vpop.permute.xlu1 %82  ;;  %v99_v21 = vpop.permute.xlu0 %98 }
  0x7e   :  { %v111_v50 = vmul.f32 %v108_v31, %v99_v21 }
  0x82   :  { %v103_v25 = vpop.permute.xlu1 %102  ;;  %v55_v26 = vpop.permute.xlu0 %54 }
  0x83   :  { %v64_v28 = vmul.f32 %v60_v24, %v55_v26  ;;  %v112_v36 = vmul.f32 %v108_v31, %v103_v25 }
  0x85   :  { %v88_v33 = vadd.f32 %v83_v20, %v64_v28 }
  0x86   :  { %v50_v30 = vpop.permute.xlu0 %49 }
  0x87   :  { %v78_v32 = vpop.permute.xlu1 %77  ;;  %v116_v39 = vadd.f32 %v112_v36, %v88_v33  ;;  %v63_v45 = vmul.f32 %v60_v24, %v50_v30 }
  0x89   :  { %v87_v51 = vadd.f32 %v78_v32, %v63_v45 }
  0x8a   :  { %v45_v35 = vpop.permute.xlu0 %44 }
  0x8b   :  { %v62_v46 = vmul.f32 %v60_v24, %v45_v35  ;;  %v115_v56 = vadd.f32 %v111_v50, %v87_v51 }
  0x8c   :  { %v131_v37 = vpop.permute.xlu1 %130 }
  0x8d   :  { %v140_v38 = vmul.f32 %v136_v34, %v131_v37 }
  0x8e   :  { %v73_v40 = vpop.permute.xlu0 %72 }
  0x8f   :  { %v144_v41 = vadd.f32 %v140_v38, %v116_v39  ;;  %v86_v52 = vadd.f32 %v73_v40, %v62_v46 }
  0x91   :  { %v40_v42 = vpop.permute.xlu1 %39  ;;  %v148_v43 = vmax.f32 %v144_v41, 0.0 }
  0x92   :  { %v68_v44 = vpop.permute.xlu0 %67  ;;  %v61_v60 = vmul.f32 %v60_v24, %v40_v42 }
  0x93   :  { %387 = vmatprep.subr.mxu0 %v148_v43 }
  0x94   :  { %388 = vmatpush3.msra.mxu0 %v148_v43  ;;  %v85_v1 = vadd.f32 %v68_v44, %v61_v60 }
  0x96   :  { %v95_v47 = vpop.permute.xlu1 %94 }
  0x97   :  { %v110_v48 = vmul.f32 %v108_v31, %v95_v47  ;;  %v123_v49 = vpop.permute.xlu0 %122 }
  0x98   :  { %v138_v54 = vmul.f32 %v136_v34, %v123_v49 }
  0x99   :  { %v114_v53 = vadd.f32 %v110_v48, %v86_v52 }
  0x9b   :  { %v127_v55 = vpop.permute.xlu1 %126  ;;  %v142_v58 = vadd.f32 %v138_v54, %v114_v53 }
  0x9c   :  { %v139_v57 = vmul.f32 %v136_v34, %v127_v55  ;;  %v170_v16 = vpop.permute.xlu0 %169 }
  0x9d   :  { %v146_v63 = vmax.f32 %v142_v58, 0.0 }
  0x9e   :  { %v143_v59 = vadd.f32 %v139_v57, %v115_v56 }
  0xa0   :  { %v147_v61 = vmax.f32 %v143_v59, 0.0  ;;  %v91_v62 = vpop.permute.xlu1 %90  ;;  %v284_v30 = vpop.permute.xlu0 %283 }
  0xa1   :  { %v109_v0 = vmul.f32 %v108_v31, %v91_v62  ;;  %v289_v31 = vrot.slane %v284_v30, %v59_v22 }
  0xa2   :  { %389 = vmatprep.subr.mxu0 %v147_v61 }
  0xa3   :  { %390 = vmatpush3.msra.mxu0 %v147_v61  ;;  %v113_v3 = vadd.f32 %v109_v0, %v85_v1 }
  0xa4   :  { %391 = vmatprep.subr.mxu0 %v146_v63 }
  0xa5   :  { %v119_v2 = vpop.permute.xlu1 %118  ;;  %392 = vmatpush3.msra.mxu0 %v146_v63 }
  0xa6   :  { %v137_v4 = vmul.f32 %v136_v34, %v119_v2 }
  0xa8   :  { %v141_v5 = vadd.f32 %v137_v4, %v113_v3 }
  0xaa   :  { %v145_v6 = vmax.f32 %v141_v5, 0.0  ;;  %v175_v11 = vpop.permute.xlu1 %174 }
  0xac   :  { %393 = vmatprep.subr.mxu0 %v145_v6 }
  0xad   :  { %394 = vmatpush3.msra.mxu0 %v145_v6 }
  0xae   :  { %396 = vmatmul.mubr.msk.f32.vlgmr.msra.gmra.mxu0 %vm177_vm0, %v150_v7  ;;  %v165_v12 = vpop.permute.xlu1 %164 }
  0xaf   :  { %398 = vmatprep.mubr.msk.f32.mxu0 %vm177_vm0, %v151_v8 }
  0xb2   :  { %399 = vmatmul.mubr.msk.f32.gmra.mxu0 %vm177_vm0, %v152_v9  ;;  %v160_v18 = vpop.permute.xlu1 %159 }
 0x16e   :  { %v397_v13 = vpop.f32.mrf.mxu0 }
 0x16f   :  { %v262_v21 = vadd.f32 %v397_v13, %v165_v12 }
 0x170   :  { %v256_v14 = vpop.f32.mrf.mxu0 }
 0x171   :  { %v257_v25 = vadd.f32 %v256_v14, %v160_v18  ;;  %v276_v27 = vmax.f32 %v262_v21, 0.0 }
 0x172   :  { %v400_v15 = vpop.f32.mrf.mxu0 }
 0x173   :  { %v272_v17 = vadd.f32 %v400_v15, %v175_v11  ;;  %v275_v28 = vmax.f32 %v257_v25, 0.0 }
 0x174   :  { %v266_v20 = vpop.f32.mrf.mxu0 }
 0x175   :  { %v278_v23 = vmax.f32 %v272_v17, 0.0  ;;  %v267_v24 = vadd.f32 %v266_v20, %v170_v16 }
 0x177   :  { %v277_v26 = vmax.f32 %v267_v24, 0.0  ;;  %402 = vmatpush3.msra.mxu1 %v278_v23 }
 0x178   :  { %403 = vmatprep.subr.mxu1 %v436_v10 }
 0x179   :  { %404 = vmatpush3.msra.mxu1 %v277_v26 }
 0x17a   :  { %405 = vmatprep.subr.mxu1 %v436_v10 }
 0x17b   :  { %406 = vmatpush3.msra.mxu1 %v276_v27 }
 0x17c   :  { %407 = vmatprep.subr.mxu1 %v436_v10 }
 0x17d   :  { %408 = vmatpush3.msra.mxu1 %v275_v28 }
 0x17e   :  { %410 = vmatmul.mubr.msk.f32.vlgmr.msra.gmra.mxu1 %vm177_vm0, %v279_v29 }
 0x23e   :  { %v359_v32 = vpop.f32.mrf.mxu1 }
 0x23f   :  { %v360_v33 = vadd.f32 %v359_v32, %v289_v31 }
 0x240   :  { %v411_v34 = vpop.f32.mrf.mxu1 }
 0x241   :  { %431 = vtanh.f32 %v360_v33 }
 0x24e   :  { %v432_v35 = vpop.eup %431 }
 0x24f   :  { %364 = vst [vmem:[%s559_s7] sm:$0x1] %v432_v35 }

</bundles_post_ra>
